<compile_context>
chip_gen: v7x
topology: tpu7x:2x2x1
jax: 0.10.0
libtpu: 0.0.40
codegen_flags: <defaults>
</compile_context>

<pallas_src>
import jax
import jax.numpy as jnp
from jax.experimental import pallas as pl
from jax.experimental.pallas import tpu as pltpu

FOLD = 8  # batch rows folded into the lane dimension


def _round_up(x, m):
    return ((x + m - 1) // m) * m


def _critic_kernel(obs_ref, w1_ref, b1_ref, w2_ref, b2_ref, w3_ref, b3_ref,
                   out_ref):
    # fc1 + tanh (folded: 8 batch rows per sublane row, block-diag W1)
    h = jnp.dot(obs_ref[...], w1_ref[...], preferred_element_type=jnp.float32)
    h = jnp.tanh(h + b1_ref[...])
    # fc2 + tanh
    h = jnp.dot(h.astype(w2_ref.dtype), w2_ref[...],
                preferred_element_type=jnp.float32)
    h = jnp.tanh(h + b2_ref[...])
    # fc3: block-diag [8*hidden2, 8]; result stays folded as [rows, 8]
    v = jnp.dot(h.astype(w3_ref.dtype), w3_ref[...],
                preferred_element_type=jnp.float32)
    out_ref[...] = (v + b3_ref[...]).astype(out_ref.dtype)


def _fold_weights(params, io_dtype):
    """Block-diagonal-replicate weights x FOLD, tile biases x FOLD."""
    w1, b1, w2, b2, w3, b3 = params
    eye = jnp.eye(FOLD, dtype=jnp.float32)
    w1b = jnp.kron(eye, w1).astype(io_dtype)
    w2b = jnp.kron(eye, w2).astype(io_dtype)
    w3b = jnp.kron(eye, w3).astype(io_dtype)
    b1b = jnp.tile(b1, (1, FOLD))          # biases stay f32 (added post-acc)
    b2b = jnp.tile(b2, (1, FOLD))
    b3b = jnp.tile(b3, (1, FOLD))
    return w1b, b1b, w2b, b2b, w3b, b3b


def critic_forward(obs, params, *, tile_b=8192, io_dtype=jnp.float32,
                   vmem_budget_bytes=40 << 20):
    """obs: [B, obs_dim] float32 -> value [B, 1] float32."""
    w1, b1, w2, b2, w3, b3 = params
    B, obs_dim = obs.shape
    hidden1 = w1.shape[1]
    hidden2 = w2.shape[1]
    io_dtype = jnp.dtype(io_dtype)

    obs_f = FOLD * obs_dim
    h1_f = FOLD * hidden1
    h2_f = FOLD * hidden2
    lane = 128

    # --- batch-tile selection ------------------------------------------------
    # tile_b must be a multiple of FOLD * sublane-granule (8 for f32 obs,
    # 16 for 16-bit obs) so the folded block keeps aligned sublanes.
    gran = FOLD * (8 if io_dtype.itemsize >= 4 else 16)

    # VMEM bytes per (un-folded) batch row: double-buffered obs & out blocks
    # plus the two live folded f32 hidden activations.
    per_row = (
        2 * _round_up(obs_f, lane) * io_dtype.itemsize
        + 2 * _round_up(FOLD, lane) * 4
        + (_round_up(h1_f, lane) + _round_up(h2_f, lane)) * 4
    ) / FOLD
    weight_bytes = int(
        (obs_f * h1_f + h1_f * h2_f + h2_f * FOLD) * io_dtype.itemsize
        + (h1_f + h2_f + FOLD) * 4)
    cap_rows = int((vmem_budget_bytes - weight_bytes - (4 << 20)) // per_row)
    tile_b = int(min(tile_b, max(gran, cap_rows)))

    b_pad_min = _round_up(B, gran)
    tile_b = min(tile_b, b_pad_min)
    tile_b = max(gran, (tile_b // gran) * gran)
    num_tiles = pl.cdiv(B, tile_b)
    b_pad = num_tiles * tile_b

    # Keep >=2 grid steps when there is enough work so the "parallel" batch
    # axis can feed both TensorCores on v7x (harmless on single-TC chips).
    if num_tiles == 1 and b_pad >= 2 * gran:
        tile_b = max(gran, _round_up(b_pad // 2, gran))
        num_tiles = pl.cdiv(b_pad, tile_b)
        b_pad = num_tiles * tile_b

    tile_rows = tile_b // FOLD

    # --- lane-dense folded obs: [B, obs_dim] -> [B/8, 8*obs_dim] (free) ------
    obs_p = obs if b_pad == B else jnp.pad(obs, ((0, b_pad - B), (0, 0)))
    obs_folded = obs_p.reshape(b_pad // FOLD, obs_f).astype(io_dtype)

    w1b, b1b, w2b, b2b, w3b, b3b = _fold_weights(params, io_dtype)

    const = lambda i: (0, 0)  # weights/biases: resident, fetched once

    flops = 2 * (b_pad // FOLD) * (obs_f * h1_f + h1_f * h2_f + h2_f * FOLD)
    bytes_accessed = int((b_pad // FOLD) * obs_f * io_dtype.itemsize
                         + b_pad * 4 + weight_bytes)
    vmem_limit = int(min(48 << 20,
                         max(32 << 20,
                             int(per_row * tile_b) + weight_bytes + (4 << 20))))

    out = pl.pallas_call(
        _critic_kernel,
        out_shape=jax.ShapeDtypeStruct((b_pad // FOLD, FOLD), jnp.float32),
        grid=(num_tiles,),
        in_specs=[
            pl.BlockSpec((tile_rows, obs_f), lambda i: (i, 0)),  # obs (folded)
            pl.BlockSpec((obs_f, h1_f), const),                  # W1 block-diag
            pl.BlockSpec((1, h1_f), const),                      # b1 tiled
            pl.BlockSpec((h1_f, h2_f), const),                   # W2 block-diag
            pl.BlockSpec((1, h2_f), const),                      # b2 tiled
            pl.BlockSpec((h2_f, FOLD), const),                   # W3 block-diag
            pl.BlockSpec((1, FOLD), const),                      # b3 tiled
        ],
        out_specs=pl.BlockSpec((tile_rows, FOLD), lambda i: (i, 0)),
        compiler_params=pltpu.CompilerParams(
            dimension_semantics=("parallel",),
            vmem_limit_bytes=vmem_limit),
        cost_estimate=pl.CostEstimate(
            flops=flops,
            transcendentals=b_pad * (hidden1 + hidden2),
            bytes_accessed=bytes_accessed),
    )(obs_folded, w1b, b1b, w2b, b2b, w3b, b3b)

    # Unfold: element (r, j) of the folded output is batch row 8*r + j.
    return out.reshape(b_pad, 1)[:B]


def init_critic_params(key, obs_dim, hidden1, hidden2):
    """Deterministic init mimicking nn.Linear default (uniform +-1/sqrt(fan_in))."""
    ks = jax.random.split(key, 6)

    def linear(kw, kb, fan_in, fan_out):
        bound = 1.0 / jnp.sqrt(jnp.float32(fan_in))
        w = jax.random.uniform(kw, (fan_in, fan_out), jnp.float32, -bound, bound)
        b = jax.random.uniform(kb, (1, fan_out), jnp.float32, -bound, bound)
        return w, b

    w1, b1 = linear(ks[0], ks[1], obs_dim, hidden1)
    w2, b2 = linear(ks[2], ks[3], hidden1, hidden2)
    w3, b3 = linear(ks[4], ks[5], hidden2, 1)
    return (w1, b1, w2, b2, w3, b3)


def critic_ref(obs, params):
    w1, b1, w2, b2, w3, b3 = params
    x = jnp.tanh(obs @ w1 + b1)
    x = jnp.tanh(x @ w2 + b2)
    return x @ w3 + b3


if __name__ == "__main__":
    obs_dim, hidden1, hidden2 = 16, 32, 32

    key = jax.random.PRNGKey(0)
    kp, kx1, kx2 = jax.random.split(key, 3)
    params = init_critic_params(kp, obs_dim, hidden1, hidden2)

    # 1) Small batch (single grid step), exact f32 semantics.
    obs = jax.random.normal(kx1, (8, obs_dim), jnp.float32)
    out = jax.block_until_ready(critic_forward(obs, params))
    exp = critic_ref(obs, params)
    assert out.shape == (8, 1)
    assert jnp.allclose(out, exp, atol=1e-4, rtol=1e-4)

    # 2) Batch not divisible by the tile -> exercises multi-step grid + padding.
    obs2 = jax.random.normal(kx2, (200, obs_dim), jnp.float32)
    out2 = jax.block_until_ready(critic_forward(obs2, params, tile_b=64))
    exp2 = critic_ref(obs2, params)
    assert out2.shape == (200, 1)
    assert jnp.allclose(out2, exp2, atol=1e-4, rtol=1e-4)

    # 3) Default (large-tile) path -> exercises the >=2-tile split for v7x.
    out3 = jax.block_until_ready(critic_forward(obs2, params))
    assert jnp.allclose(out3, exp2, atol=1e-4, rtol=1e-4)

    # 4) Optional bf16 obs/weight HBM stream (f32 accumulation) -- looser tol.
    out4 = jax.block_until_ready(
        critic_forward(obs2, params, io_dtype=jnp.bfloat16))
    assert jnp.allclose(out4, exp2, atol=2e-2, rtol=2e-2)

    print("KERNEL_OK")
</pallas_src>

<mosaic_0001>
module attributes {stable_mosaic.version = 11 : i64} {
  func.func @_critic_kernel(%arg0: i32, %arg1: memref<8x128xf32, #tpu.memory_space<vmem>>, %arg2: memref<128x256xf32, #tpu.memory_space<vmem>>, %arg3: memref<1x256xf32, #tpu.memory_space<vmem>>, %arg4: memref<256x256xf32, #tpu.memory_space<vmem>>, %arg5: memref<1x256xf32, #tpu.memory_space<vmem>>, %arg6: memref<256x8xf32, #tpu.memory_space<vmem>>, %arg7: memref<1x8xf32, #tpu.memory_space<vmem>>, %arg8: memref<8x8xf32, #tpu.memory_space<vmem>>) attributes {dimension_semantics = [#tpu.dimension_semantics<parallel>], iteration_bounds = array<i64: 1>, scalar_prefetch = 0 : i64, scratch_operands = 0 : i64, tpu.core_type = #tpu.core_type<tc>, window_params = [{transform_indices = @transform_0, window_bounds = array<i64: 8, 128>}, {pipeline_mode = #tpu.pipeline_mode<synchronous>, transform_indices = @transform_1, window_bounds = array<i64: 128, 256>}, {pipeline_mode = #tpu.pipeline_mode<synchronous>, transform_indices = @transform_2, window_bounds = array<i64: 1, 256>}, {pipeline_mode = #tpu.pipeline_mode<synchronous>, transform_indices = @transform_3, window_bounds = array<i64: 256, 256>}, {pipeline_mode = #tpu.pipeline_mode<synchronous>, transform_indices = @transform_4, window_bounds = array<i64: 1, 256>}, {pipeline_mode = #tpu.pipeline_mode<synchronous>, transform_indices = @transform_5, window_bounds = array<i64: 256, 8>}, {pipeline_mode = #tpu.pipeline_mode<synchronous>, transform_indices = @transform_6, window_bounds = array<i64: 1, 8>}, {transform_indices = @transform_7, window_bounds = array<i64: 8, 8>}]} {
    %c0 = arith.constant 0 : index
    %c0_0 = arith.constant 0 : index
    %0 = vector.load %arg1[%c0, %c0_0] : memref<8x128xf32, #tpu.memory_space<vmem>>, vector<8x128xf32>
    %c0_1 = arith.constant 0 : index
    %c0_2 = arith.constant 0 : index
    %1 = vector.load %arg2[%c0_1, %c0_2] : memref<128x256xf32, #tpu.memory_space<vmem>>, vector<128x256xf32>
    %cst = arith.constant dense<0.000000e+00> : vector<8x256xf32>
    %2 = tpu.matmul %0, %1, %cst {dimension_numbers = #tpu.dot_dimension_numbers<[1], [0], [0], [1], [0, 0, 1, 1], [], []>} : vector<8x128xf32>, vector<128x256xf32>, vector<8x256xf32> -> vector<8x256xf32>
    %c0_3 = arith.constant 0 : index
    %c0_4 = arith.constant 0 : index
    %3 = vector.load %arg3[%c0_3, %c0_4] : memref<1x256xf32, #tpu.memory_space<vmem>>, vector<1x256xf32>
    %4 = vector.broadcast %3 : vector<1x256xf32> to vector<8x256xf32>
    %5 = arith.addf %2, %4 : vector<8x256xf32>
    %6 = math.tanh %5 : vector<8x256xf32>
    %c0_5 = arith.constant 0 : index
    %c0_6 = arith.constant 0 : index
    %7 = vector.load %arg4[%c0_5, %c0_6] : memref<256x256xf32, #tpu.memory_space<vmem>>, vector<256x256xf32>
    %cst_7 = arith.constant dense<0.000000e+00> : vector<8x256xf32>
    %8 = tpu.matmul %6, %7, %cst_7 {dimension_numbers = #tpu.dot_dimension_numbers<[1], [0], [0], [1], [0, 0, 1, 1], [], []>} : vector<8x256xf32>, vector<256x256xf32>, vector<8x256xf32> -> vector<8x256xf32>
    %c0_8 = arith.constant 0 : index
    %c0_9 = arith.constant 0 : index
    %9 = vector.load %arg5[%c0_8, %c0_9] : memref<1x256xf32, #tpu.memory_space<vmem>>, vector<1x256xf32>
    %10 = vector.broadcast %9 : vector<1x256xf32> to vector<8x256xf32>
    %11 = arith.addf %8, %10 : vector<8x256xf32>
    %12 = math.tanh %11 : vector<8x256xf32>
    %c0_10 = arith.constant 0 : index
    %c0_11 = arith.constant 0 : index
    %13 = vector.load %arg6[%c0_10, %c0_11] : memref<256x8xf32, #tpu.memory_space<vmem>>, vector<256x8xf32>
    %cst_12 = arith.constant dense<0.000000e+00> : vector<8x8xf32>
    %14 = tpu.matmul %12, %13, %cst_12 {dimension_numbers = #tpu.dot_dimension_numbers<[1], [0], [0], [1], [0, 0, 1, 1], [], []>} : vector<8x256xf32>, vector<256x8xf32>, vector<8x8xf32> -> vector<8x8xf32>
    %c0_13 = arith.constant 0 : index
    %c0_14 = arith.constant 0 : index
    %15 = vector.load %arg7[%c0_13, %c0_14] : memref<1x8xf32, #tpu.memory_space<vmem>>, vector<1x8xf32>
    %16 = vector.broadcast %15 : vector<1x8xf32> to vector<8x8xf32>
    %17 = arith.addf %14, %16 : vector<8x8xf32>
    %c0_15 = arith.constant 0 : index
    %c0_16 = arith.constant 0 : index
    %18 = vector.load %arg8[%c0_15, %c0_16] : memref<8x8xf32, #tpu.memory_space<vmem>>, vector<8x8xf32>
    tpu.vector_store %arg8[%c0_15, %c0_16], %17 {strides = array<i32>} : memref<8x8xf32, #tpu.memory_space<vmem>>, vector<8x8xf32>,
    return
  }
  func.func @transform_0(%arg0: i32) -> (i32, i32) {
    %c0_i32 = arith.constant 0 : i32
    %c0_i32_0 = arith.constant 0 : i32
    return %arg0, %c0_i32 : i32, i32
  }
  func.func @transform_1(%arg0: i32) -> (i32, i32) {
    %c0_i32 = arith.constant 0 : i32
    %c0_i32_0 = arith.constant 0 : i32
    %c0_i32_1 = arith.constant 0 : i32
    return %c0_i32, %c0_i32_0 : i32, i32
  }
  func.func @transform_2(%arg0: i32) -> (i32, i32) {
    %c0_i32 = arith.constant 0 : i32
    %c0_i32_0 = arith.constant 0 : i32
    %c0_i32_1 = arith.constant 0 : i32
    return %c0_i32, %c0_i32_0 : i32, i32
  }
  func.func @transform_3(%arg0: i32) -> (i32, i32) {
    %c0_i32 = arith.constant 0 : i32
    %c0_i32_0 = arith.constant 0 : i32
    %c0_i32_1 = arith.constant 0 : i32
    return %c0_i32, %c0_i32_0 : i32, i32
  }
  func.func @transform_4(%arg0: i32) -> (i32, i32) {
    %c0_i32 = arith.constant 0 : i32
    %c0_i32_0 = arith.constant 0 : i32
    %c0_i32_1 = arith.constant 0 : i32
    return %c0_i32, %c0_i32_0 : i32, i32
  }
  func.func @transform_5(%arg0: i32) -> (i32, i32) {
    %c0_i32 = arith.constant 0 : i32
    %c0_i32_0 = arith.constant 0 : i32
    %c0_i32_1 = arith.constant 0 : i32
    return %c0_i32, %c0_i32_0 : i32, i32
  }
  func.func @transform_6(%arg0: i32) -> (i32, i32) {
    %c0_i32 = arith.constant 0 : i32
    %c0_i32_0 = arith.constant 0 : i32
    %c0_i32_1 = arith.constant 0 : i32
    return %c0_i32, %c0_i32_0 : i32, i32
  }
  func.func @transform_7(%arg0: i32) -> (i32, i32) {
    %c0_i32 = arith.constant 0 : i32
    %c0_i32_0 = arith.constant 0 : i32
    return %arg0, %c0_i32 : i32, i32
  }
}

</mosaic_0001>

<bundles_post_ra>
// kernel: tpu_custom_call.1
= control target key start
LH: loop header
LB: loop body
LE: loop exit
PB: predicated region body
PF: predicated region fallthrough
CT: control target
= control target key end

     0   :  { %12 = vsyncpa [#allocation3], 0  ;;  %s932_s0 = inlined_call_operand.vmem [shape: f32[8,128], index: 0, kind: input, shape index: {}]   ;;  %s933_s1 = inlined_call_operand.vmem [shape: f32[128,256], index: 1, kind: input, shape index: {}]   ;;  %s934_s2 = inlined_call_operand.vmem [shape: f32[1,256], index: 2, kind: input, shape index: {}]   ;;  %s935_s3 = inlined_call_operand.hbm [shape: f32[256,256], index: 3, kind: input, shape index: {}]   ;;  %s936_s4 = inlined_call_operand.vmem [shape: f32[1,256], index: 4, kind: input, shape index: {}]   ;;  %s937_s5 = inlined_call_operand.vmem [shape: f32[256,8], index: 5, kind: input, shape index: {}]   ;;  %s938_s6 = inlined_call_operand.vmem [shape: f32[1,8], index: 6, kind: input, shape index: {}]   ;;  %s939_s7 = inlined_call_operand.hbm [shape: f32[8,8], index: 7, kind: output, shape index: {}]  }
   0x1   :  { %13 = vsyncpa [#allocation4], 0  ;;  %s659_s24 = smov [#allocation2]   ;;  %s611_s28 = scalar_lea.hbm %s935_s3, 8192 }
   0x2   :  { %s25_s25 = sshll.u32 %s659_s24, 4  ;;  %p612_p0 = scmp.ne.s32.totalorder %s935_s3, %s611_s28  ;;  %s26_s25 = int_to_ptr.vmem [resolvable:$true] %s25_s25 }
   0x3   :  { %p615_p1 = scmp.lt.u32.totalorder %s611_s28, %s935_s3 }
   0x5   :  { %p617_p2 = pnand %p615_p1, %p612_p0 }
   0x7   :  { %620 = shalt.err (!%p617_p2)
}
   0x8   :  { %s621_s10 = scalar_lea.vmem %s26_s25, 8192  ;;  %p626_p4 = scmp.lt.s32.totalorder %s26_s25, %s26_s25 }
   0x9   :  { %p622_p3 = scmp.ne.s32.totalorder %s26_s25, %s621_s10  ;;  %p627_p5 = scmp.lt.s32.totalorder %s621_s10, %s621_s10 }
   0xb   :  { %p628_p6 = por %p627_p5, %p626_p4 }
   0xd   :  { %p629_p7 = pnand %p628_p6, %p622_p3 }
   0xf   :  { %632 = shalt.err (!%p629_p7)
}
  0x10   :  { %s660_s11 = smov 256   ;;  %s661_s12 = smov 16  }
  0x11   :  { %31 = dma.hbm_to_vmem [thread:$0]  %s935_s3, 8192, %s26_s25, [#allocation3], %s660_s11, %s660_s11, %s661_s12  }
  0x12   :  { %655 = dma.done.wait [#allocation3], 8192  }
  0x13   :  { %656 = vsyncadd [#allocation3], 4294959104  ;;  %v662_v0 = vmov 0.0   ;;  %v43_v1 = vld [vmem:[%s933_s1 + $0x8] sm:$0xff]  ;;  %v45_v2 = vld [vmem:[%s933_s1 + $0x18] sm:$0xff]  ;;  %s663_s22 = smov [#allocation5]  }
  0x14   :  { %150 = vmatprep.mubr.f32.mxu0 %v662_v0  ;;  %v42_v3 = vld [vmem:[%s933_s1] sm:$0xff]  ;;  %v470_v4 = vpack.c.bf16 %v45_v2, %v43_v1  ;;  %v44_v5 = vld [vmem:[%s933_s1 + $0x10] sm:$0xff]  ;;  %v47_v6 = vld [vmem:[%s933_s1 + $0x28] sm:$0xff]  ;;  %vm417_vm0 = vcmask 64512  }
  0x15   :  { %v49_v7 = vld [vmem:[%s933_s1 + $0x38] sm:$0xff]  ;;  %v472_v8 = vpack.c.bf16 %v44_v5, %v42_v3  ;;  %v46_v10 = vld [vmem:[%s933_s1 + $0x20] sm:$0xff]  ;;  %v48_v11 = vld [vmem:[%s933_s1 + $0x30] sm:$0xff] }
  0x16   :  { %v474_v9 = vpack.c.bf16 %v49_v7, %v47_v6  ;;  %v51_v12 = vld [vmem:[%s933_s1 + $0x48] sm:$0xff]  ;;  %471 = vmatprep.subr.bf16.mxu0 %v470_v4  ;;  %v53_v13 = vld [vmem:[%s933_s1 + $0x58] sm:$0xff]  ;;  %v476_v14 = vpack.c.bf16 %v48_v11, %v46_v10  ;;  %v50_v16 = vld [vmem:[%s933_s1 + $0x40] sm:$0xff] }
  0x17   :  { %473 = vmatpush1.bf16.msra.mxu0 %v472_v8  ;;  %v478_v15 = vpack.c.bf16 %v53_v13, %v51_v12  ;;  %v52_v17 = vld [vmem:[%s933_s1 + $0x50] sm:$0xff]  ;;  %v55_v18 = vld [vmem:[%s933_s1 + $0x68] sm:$0xff]  ;;  %v57_v19 = vld [vmem:[%s933_s1 + $0x78] sm:$0xff] }
  0x18   :  { %475 = vmatprep.subr.bf16.mxu0 %v474_v9  ;;  %v480_v20 = vpack.c.bf16 %v52_v17, %v50_v16  ;;  %v482_v21 = vpack.c.bf16 %v57_v19, %v55_v18  ;;  %v54_v22 = vld [vmem:[%s933_s1 + $0x60] sm:$0xff]  ;;  %v56_v23 = vld [vmem:[%s933_s1 + $0x70] sm:$0xff]  ;;  %v59_v24 = vld [vmem:[%s933_s1 + $0x88] sm:$0xff] }
  0x19   :  { %v61_v25 = vld [vmem:[%s933_s1 + $0x98] sm:$0xff]  ;;  %v58_v26 = vld [vmem:[%s933_s1 + $0x80] sm:$0xff]  ;;  %v60_v27 = vld [vmem:[%s933_s1 + $0x90] sm:$0xff]  ;;  %v484_v31 = vpack.c.bf16 %v56_v23, %v54_v22 }
  0x1a   :  { %v160_v28 = vld [vmem:[#allocation2 + $0x8] sm:$0xff]  ;;  %v162_v29 = vld [vmem:[#allocation2 + $0x18] sm:$0xff]  ;;  %v159_v30 = vld [vmem:[#allocation2] sm:$0xff]  ;;  %v486_v36 = vpack.c.bf16 %v61_v25, %v59_v24  ;;  %v488_v46 = vpack.c.bf16 %v60_v27, %v58_v26 }
  0x1b   :  { %477 = vmatpush1.bf16.msra.mxu0 %v476_v14  ;;  %v502_v32 = vpack.c.bf16 %v162_v29, %v160_v28  ;;  %v161_v33 = vld [vmem:[#allocation2 + $0x10] sm:$0xff]  ;;  %v164_v34 = vld [vmem:[#allocation2 + $0x28] sm:$0xff]  ;;  %v166_v35 = vld [vmem:[#allocation2 + $0x38] sm:$0xff] }
  0x1c   :  { %479 = vmatprep.subr.bf16.mxu0 %v478_v15  ;;  %v504_v37 = vpack.c.bf16 %v161_v33, %v159_v30  ;;  %v506_v38 = vpack.c.bf16 %v166_v35, %v164_v34  ;;  %v163_v39 = vld [vmem:[#allocation2 + $0x20] sm:$0xff]  ;;  %v165_v40 = vld [vmem:[#allocation2 + $0x30] sm:$0xff]  ;;  %v168_v41 = vld [vmem:[#allocation2 + $0x48] sm:$0xff] }
  0x1d   :  { %v63_v42 = vld [vmem:[%s933_s1 + $0xa8] sm:$0xff]  ;;  %v65_v43 = vld [vmem:[%s933_s1 + $0xb8] sm:$0xff]  ;;  %503 = vmatprep.subr.bf16.mxu1 %v502_v32  ;;  %v508_v45 = vpack.c.bf16 %v165_v40, %v163_v39  ;;  %v62_v47 = vld [vmem:[%s933_s1 + $0xa0] sm:$0xff] }
  0x1e   :  { %v170_v44 = vld [vmem:[#allocation2 + $0x58] sm:$0xff]  ;;  %505 = vmatpush1.bf16.msra.mxu1 %v504_v37  ;;  %v167_v49 = vld [vmem:[#allocation2 + $0x40] sm:$0xff]  ;;  %v169_v50 = vld [vmem:[#allocation2 + $0x50] sm:$0xff]  ;;  %v490_v51 = vpack.c.bf16 %v65_v43, %v63_v42 }
  0x1f   :  { %481 = vmatpush1.bf16.msra.mxu0 %v480_v20  ;;  %507 = vmatprep.subr.bf16.mxu1 %v506_v38  ;;  %v510_v48 = vpack.c.bf16 %v170_v44, %v168_v41  ;;  %v64_v52 = vld [vmem:[%s933_s1 + $0xb0] sm:$0xff]  ;;  %v172_v53 = vld [vmem:[#allocation2 + $0x68] sm:$0xff]  ;;  %v174_v54 = vld [vmem:[#allocation2 + $0x78] sm:$0xff]  ;;  %v512_v57 = vpack.c.bf16 %v169_v50, %v167_v49 }
  0x20   :  { %483 = vmatprep.subr.bf16.mxu0 %v482_v21  ;;  %v67_v55 = vld [vmem:[%s933_s1 + $0xc8] sm:$0xff]  ;;  %v69_v56 = vld [vmem:[%s933_s1 + $0xd8] sm:$0xff]  ;;  %v492_v58 = vpack.c.bf16 %v64_v52, %v62_v47  ;;  %v66_v59 = vld [vmem:[%s933_s1 + $0xc0] sm:$0xff]  ;;  %v514_v60 = vpack.c.bf16 %v174_v54, %v172_v53 }
  0x21   :  { %v171_v61 = vld [vmem:[#allocation2 + $0x60] sm:$0xff]  ;;  %v173_v62 = vld [vmem:[#allocation2 + $0x70] sm:$0xff]  ;;  %v494_v63 = vpack.c.bf16 %v69_v56, %v67_v55  ;;  %v176_v1 = vld [vmem:[#allocation2 + $0x88] sm:$0xff] }
  0x22   :  { %509 = vmatpush1.bf16.msra.mxu1 %v508_v45  ;;  %v68_v0 = vld [vmem:[%s933_s1 + $0xd0] sm:$0xff]  ;;  %v178_v2 = vld [vmem:[#allocation2 + $0x98] sm:$0xff]  ;;  %v71_v3 = vld [vmem:[%s933_s1 + $0xe8] sm:$0xff]  ;;  %v516_v5 = vpack.c.bf16 %v173_v62, %v171_v61 }
  0x23   :  { %485 = vmatpush1.bf16.msra.mxu0 %v484_v31  ;;  %511 = vmatprep.subr.bf16.mxu1 %v510_v48  ;;  %v73_v4 = vld [vmem:[%s933_s1 + $0xf8] sm:$0xff]  ;;  %v496_v6 = vpack.c.bf16 %v68_v0, %v66_v59  ;;  %v70_v7 = vld [vmem:[%s933_s1 + $0xe0] sm:$0xff]  ;;  %v518_v8 = vpack.c.bf16 %v178_v2, %v176_v1  ;;  %v177_v10 = vld [vmem:[#allocation2 + $0x90] sm:$0xff] }
  0x24   :  { %487 = vmatprep.subr.bf16.mxu0 %v486_v36  ;;  %v175_v9 = vld [vmem:[#allocation2 + $0x80] sm:$0xff]  ;;  %v498_v11 = vpack.c.bf16 %v73_v4, %v71_v3  ;;  %v72_v12 = vld [vmem:[%s933_s1 + $0xf0] sm:$0xff]  ;;  %v180_v13 = vld [vmem:[#allocation2 + $0xa8] sm:$0xff] }
  0x25   :  { %v182_v14 = vld [vmem:[#allocation2 + $0xb8] sm:$0xff]  ;;  %v520_v15 = vpack.c.bf16 %v177_v10, %v175_v9  ;;  %v500_v16 = vpack.c.bf16 %v72_v12, %v70_v7  ;;  %v179_v18 = vld [vmem:[#allocation2 + $0xa0] sm:$0xff]  ;;  %v181_v19 = vld [vmem:[#allocation2 + $0xb0] sm:$0xff] }
  0x26   :  { %513 = vmatpush1.bf16.msra.mxu1 %v512_v57  ;;  %v522_v17 = vpack.c.bf16 %v182_v14, %v180_v13  ;;  %v184_v20 = vld [vmem:[#allocation2 + $0xc8] sm:$0xff]  ;;  %v186_v21 = vld [vmem:[#allocation2 + $0xd8] sm:$0xff]  ;;  %v524_v22 = vpack.c.bf16 %v181_v19, %v179_v18  ;;  %v41_v23 = vld [vmem:[%s932_s0] sm:$0xff] }
  0x27   :  { %489 = vmatpush1.bf16.msra.mxu0 %v488_v46  ;;  %515 = vmatprep.subr.bf16.mxu1 %v514_v60  ;;  %v526_v24 = vpack.c.bf16 %v186_v21, %v184_v20  ;;  %v183_v25 = vld [vmem:[#allocation2 + $0xc0] sm:$0xff]  ;;  %v185_v26 = vld [vmem:[#allocation2 + $0xd0] sm:$0xff]  ;;  %v188_v27 = vld [vmem:[#allocation2 + $0xe8] sm:$0xff] }
  0x28   :  { %491 = vmatprep.subr.bf16.mxu0 %v490_v51  ;;  %v190_v28 = vld [vmem:[#allocation2 + $0xf8] sm:$0xff]  ;;  %v528_v29 = vpack.c.bf16 %v185_v26, %v183_v25  ;;  %v187_v31 = vld [vmem:[#allocation2 + $0xe0] sm:$0xff]  ;;  %v189_v32 = vld [vmem:[#allocation2 + $0xf0] sm:$0xff] }
  0x29   :  { %v530_v30 = vpack.c.bf16 %v190_v28, %v188_v27  ;;  %v192_v33 = vld [vmem:[#allocation2 + $0x108] sm:$0xff]  ;;  %v194_v34 = vld [vmem:[#allocation2 + $0x118] sm:$0xff]  ;;  %v532_v35 = vpack.c.bf16 %v189_v32, %v187_v31  ;;  %v191_v37 = vld [vmem:[#allocation2 + $0x100] sm:$0xff] }
  0x2a   :  { %517 = vmatpush1.bf16.msra.mxu1 %v516_v5  ;;  %v534_v36 = vpack.c.bf16 %v194_v34, %v192_v33  ;;  %v193_v38 = vld [vmem:[#allocation2 + $0x110] sm:$0xff]  ;;  %v196_v39 = vld [vmem:[#allocation2 + $0x128] sm:$0xff]  ;;  %v198_v40 = vld [vmem:[#allocation2 + $0x138] sm:$0xff] }
  0x2b   :  { %493 = vmatpush1.bf16.msra.mxu0 %v492_v58  ;;  %519 = vmatprep.subr.bf16.mxu1 %v518_v8  ;;  %v536_v41 = vpack.c.bf16 %v193_v38, %v191_v37  ;;  %v538_v42 = vpack.c.bf16 %v198_v40, %v196_v39  ;;  %v195_v43 = vld [vmem:[#allocation2 + $0x120] sm:$0xff]  ;;  %v197_v44 = vld [vmem:[#allocation2 + $0x130] sm:$0xff]  ;;  %v200_v45 = vld [vmem:[#allocation2 + $0x148] sm:$0xff] }
  0x2c   :  { %495 = vmatprep.subr.bf16.mxu0 %v494_v63  ;;  %v202_v46 = vld [vmem:[#allocation2 + $0x158] sm:$0xff]  ;;  %v540_v47 = vpack.c.bf16 %v197_v44, %v195_v43  ;;  %v199_v49 = vld [vmem:[#allocation2 + $0x140] sm:$0xff]  ;;  %v201_v50 = vld [vmem:[#allocation2 + $0x150] sm:$0xff] }
  0x2d   :  { %v542_v48 = vpack.c.bf16 %v202_v46, %v200_v45  ;;  %v204_v51 = vld [vmem:[#allocation2 + $0x168] sm:$0xff]  ;;  %v206_v52 = vld [vmem:[#allocation2 + $0x178] sm:$0xff]  ;;  %v544_v53 = vpack.c.bf16 %v201_v50, %v199_v49  ;;  %v203_v55 = vld [vmem:[#allocation2 + $0x160] sm:$0xff] }
  0x2e   :  { %521 = vmatpush1.bf16.msra.mxu1 %v520_v15  ;;  %v546_v54 = vpack.c.bf16 %v206_v52, %v204_v51  ;;  %v205_v56 = vld [vmem:[#allocation2 + $0x170] sm:$0xff]  ;;  %v208_v58 = vld [vmem:[#allocation2 + $0x188] sm:$0xff]  ;;  %v210_v59 = vld [vmem:[#allocation2 + $0x198] sm:$0xff] }
  0x2f   :  { %497 = vmatpush1.bf16.msra.mxu0 %v496_v6  ;;  %523 = vmatprep.subr.bf16.mxu1 %v522_v17  ;;  %v548_v57 = vpack.c.bf16 %v205_v56, %v203_v55  ;;  %v550_v60 = vpack.c.bf16 %v210_v59, %v208_v58  ;;  %v207_v61 = vld [vmem:[#allocation2 + $0x180] sm:$0xff]  ;;  %v209_v62 = vld [vmem:[#allocation2 + $0x190] sm:$0xff]  ;;  %v212_v0 = vld [vmem:[#allocation2 + $0x1a8] sm:$0xff] }
  0x30   :  { %499 = vmatprep.subr.bf16.mxu0 %v498_v11  ;;  %v552_v63 = vpack.c.bf16 %v209_v62, %v207_v61  ;;  %v214_v1 = vld [vmem:[#allocation2 + $0x1b8] sm:$0xff]  ;;  %v211_v3 = vld [vmem:[#allocation2 + $0x1a0] sm:$0xff]  ;;  %v213_v4 = vld [vmem:[#allocation2 + $0x1b0] sm:$0xff] }
  0x31   :  { %v554_v2 = vpack.c.bf16 %v214_v1, %v212_v0  ;;  %v556_v5 = vpack.c.bf16 %v213_v4, %v211_v3  ;;  %v216_v6 = vld [vmem:[#allocation2 + $0x1c8] sm:$0xff]  ;;  %v218_v7 = vld [vmem:[#allocation2 + $0x1d8] sm:$0xff]  ;;  %v215_v8 = vld [vmem:[#allocation2 + $0x1c0] sm:$0xff] }
  0x32   :  { %525 = vmatpush1.bf16.msra.mxu1 %v524_v22  ;;  %v558_v9 = vpack.c.bf16 %v218_v7, %v216_v6  ;;  %v217_v10 = vld [vmem:[#allocation2 + $0x1d0] sm:$0xff]  ;;  %v220_v11 = vld [vmem:[#allocation2 + $0x1e8] sm:$0xff]  ;;  %v222_v12 = vld [vmem:[#allocation2 + $0x1f8] sm:$0xff] }
  0x33   :  { %501 = vmatpush1.bf16.msra.mxu0 %v500_v16  ;;  %527 = vmatprep.subr.bf16.mxu1 %v526_v24  ;;  %v560_v13 = vpack.c.bf16 %v217_v10, %v215_v8  ;;  %v562_v14 = vpack.c.bf16 %v222_v12, %v220_v11  ;;  %v219_v15 = vld [vmem:[#allocation2 + $0x1e0] sm:$0xff]  ;;  %v221_v16 = vld [vmem:[#allocation2 + $0x1f0] sm:$0xff]  ;;  %v325_v19 = vld [vmem:[%s937_s5 + $0x88] sm:$0xff] }
  0x34   :  { %v564_v17 = vpack.c.bf16 %v221_v16, %v219_v15  ;;  %v324_v18 = vld [vmem:[%s937_s5 + $0x80] sm:$0xff]  ;;  %v309_v22 = vld [vmem:[%s937_s5 + $0x8] sm:$0xff]  ;;  %v327_v24 = vld [vmem:[%s937_s5 + $0x98] sm:$0xff] }
  0x35   :  { %v308_v20 = vld [vmem:[%s937_s5] sm:$0xff]  ;;  %v566_v21 = vpack.c.bf16 %v325_v19, %v324_v18  ;;  %v310_v27 = vld [vmem:[%s937_s5 + $0x10] sm:$0xff]  ;;  %v311_v28 = vld [vmem:[%s937_s5 + $0x18] sm:$0xff] }
  0x36   :  { %151 = vmatmul.mubr.f32.vlgmr.msra.gmra.mrb[0].mxu0 %v41_v23  ;;  %529 = vmatpush1.bf16.msra.mxu1 %v528_v29  ;;  %v326_v23 = vld [vmem:[%s937_s5 + $0x90] sm:$0xff]  ;;  %v568_v25 = vpack.c.bf16 %v309_v22, %v308_v20  ;;  %v328_v29 = vld [vmem:[%s937_s5 + $0xa0] sm:$0xff]  ;;  %v572_v31 = vpack.c.bf16 %v311_v28, %v310_v27  ;;  %v313_v34 = vld [vmem:[%s937_s5 + $0x28] sm:$0xff] }
  0x37   :  { %531 = vmatprep.subr.bf16.mxu1 %v530_v30  ;;  %v570_v26 = vpack.c.bf16 %v327_v24, %v326_v23  ;;  %567 = vmatprep.subr.bf16.mxu0 %v566_v21  ;;  %v329_v30 = vld [vmem:[%s937_s5 + $0xa8] sm:$0xff]  ;;  %v312_v33 = vld [vmem:[%s937_s5 + $0x20] sm:$0xff]  ;;  %v314_v39 = vld [vmem:[%s937_s5 + $0x30] sm:$0xff] }
  0x38   :  { %569 = vmatpush3.bf16.msra.mxu0 %v568_v25  ;;  %v574_v32 = vpack.c.bf16 %v329_v30, %v328_v29  ;;  %v576_v37 = vpack.c.bf16 %v313_v34, %v312_v33  ;;  %v315_v40 = vld [vmem:[%s937_s5 + $0x38] sm:$0xff]  ;;  %v74_v45 = vld [vmem:[%s934_s2] sm:$0x3]  ;;  %v333_v56 = vld [vmem:[%s937_s5 + $0xc8] sm:$0xff] }
  0x39   :  { %571 = vmatprep.subr.bf16.mxu0 %v570_v26  ;;  %v332_v55 = vld [vmem:[%s937_s5 + $0xc0] sm:$0xff]  ;;  %v317_v59 = vld [vmem:[%s937_s5 + $0x48] sm:$0xff]  ;;  %v334_v61 = vld [vmem:[%s937_s5 + $0xd0] sm:$0xff] }
  0x3a   :  { %533 = vmatpush1.bf16.msra.mxu1 %v532_v35  ;;  %v330_v35 = vld [vmem:[%s937_s5 + $0xb0] sm:$0xff]  ;;  %v316_v58 = vld [vmem:[%s937_s5 + $0x40] sm:$0xff]  ;;  %v335_v62 = vld [vmem:[%s937_s5 + $0xd8] sm:$0xff] }
  0x3b   :  { %535 = vmatprep.subr.bf16.mxu1 %v534_v36  ;;  %v331_v36 = vld [vmem:[%s937_s5 + $0xb8] sm:$0xff]  ;;  %v318_v0 = vld [vmem:[%s937_s5 + $0x50] sm:$0xff]  ;;  %v336_v3 = vld [vmem:[%s937_s5 + $0xe0] sm:$0xff] }
  0x3c   :  { %573 = vmatpush3.bf16.msra.mxu0 %v572_v31  ;;  %v578_v38 = vpack.c.bf16 %v331_v36, %v330_v35  ;;  %v319_v1 = vld [vmem:[%s937_s5 + $0x58] sm:$0xff]  ;;  %v337_v4 = vld [vmem:[%s937_s5 + $0xe8] sm:$0xff]  ;;  %v338_v8 = vld [vmem:[%s937_s5 + $0xf0] sm:$0xff] }
  0x3d   :  { %575 = vmatprep.subr.bf16.mxu0 %v574_v32  ;;  %v590_v6 = vpack.c.bf16 %v337_v4, %v336_v3  ;;  %v321_v7 = vld [vmem:[%s937_s5 + $0x68] sm:$0xff]  ;;  %v322_v12 = vld [vmem:[%s937_s5 + $0x70] sm:$0xff]  ;;  %v223_v15 = vld [vmem:[%s936_s4] sm:$0x3]  ;;  %s425_s4 = sshll.u32 %s663_s22, 4  ;;  %s426_s4 = int_to_ptr.vmem [resolvable:$true] %s425_s4 }
  0x3e   :  { %537 = vmatpush1.bf16.msra.mxu1 %v536_v41  ;;  %v580_v41 = vpack.c.bf16 %v315_v40, %v314_v39  ;;  %v434_v25 = vld [vmem:[%s938_s6] ss:$0 sm:$0xff]  ;;  %s633_s3 = scalar_lea.vmem %s426_s4, 128  ;;  %p638_p9 = scmp.lt.s32.totalorder %s426_s4, %s426_s4 }
  0x3f   :  { %539 = vmatprep.subr.bf16.mxu1 %v538_v42  ;;  %v76_v42 = vlaneseq  ;;  %p634_p8 = scmp.ne.s32.totalorder %s426_s4, %s633_s3  ;;  %p639_p10 = scmp.lt.s32.totalorder %s633_s3, %s633_s3 }
  0x40   :  { %577 = vmatpush3.bf16.msra.mxu0 %v576_v37 }
  0x41   :  { %579 = vmatprep.subr.bf16.mxu0 %v578_v38  ;;  %v77_v43 = vshrl.u32 %v76_v42, 7  ;;  %p640_p11 = por %p639_p10, %p638_p9 }
  0x42   :  { %541 = vmatpush1.bf16.msra.mxu1 %v540_v47 }
  0x43   :  { %543 = vmatprep.subr.bf16.mxu1 %v542_v48  ;;  %v78_v44 = vsub.s32 0, %v77_v43  ;;  %v82_v46 = vsub.s32 1, %v77_v43  ;;  %p641_p12 = pnand %p640_p11, %p634_p8 }
  0x44   :  { %581 = vmatpush3.bf16.msra.mxu0 %v580_v41 }
  0x45   :  { %v79_v47 = vrot.slane %v74_v45, %v78_v44  ;;  %v83_v48 = vrot.slane %v74_v45, %v82_v46  ;;  %v228_v16 = vrot.slane %v223_v15, %v78_v44 }
  0x46   :  { %545 = vmatpush1.bf16.msra.mxu1 %v544_v53 }
  0x47   :  { %547 = vmatprep.subr.bf16.mxu1 %v546_v54 }
  0x4a   :  { %549 = vmatpush1.bf16.msra.mxu1 %v548_v57  ;;  %v582_v57 = vpack.c.bf16 %v333_v56, %v332_v55 }
  0x4b   :  { %551 = vmatprep.subr.bf16.mxu1 %v550_v60  ;;  %v584_v60 = vpack.c.bf16 %v317_v59, %v316_v58 }
  0x4c   :  { %583 = vmatprep.subr.bf16.mxu0 %v582_v57 }
  0x4d   :  { %585 = vmatpush3.bf16.msra.mxu0 %v584_v60 }
  0x4e   :  { %553 = vmatpush1.bf16.msra.mxu1 %v552_v63  ;;  %v586_v63 = vpack.c.bf16 %v335_v62, %v334_v61 }
  0x4f   :  { %555 = vmatprep.subr.bf16.mxu1 %v554_v2  ;;  %v588_v2 = vpack.c.bf16 %v319_v1, %v318_v0 }
  0x50   :  { %587 = vmatprep.subr.bf16.mxu0 %v586_v63 }
  0x51   :  { %589 = vmatpush3.bf16.msra.mxu0 %v588_v2 }
  0x52   :  { %557 = vmatpush1.bf16.msra.mxu1 %v556_v5  ;;  %v320_v5 = vld [vmem:[%s937_s5 + $0x60] sm:$0xff]  ;;  %591 = vmatprep.subr.bf16.mxu0 %v590_v6 }
  0x53   :  { %559 = vmatprep.subr.bf16.mxu1 %v558_v9  ;;  %v339_v9 = vld [vmem:[%s937_s5 + $0xf8] sm:$0xff]  ;;  %v592_v10 = vpack.c.bf16 %v321_v7, %v320_v5 }
  0x54   :  { %v594_v11 = vpack.c.bf16 %v339_v9, %v338_v8 }
  0x55   :  { %593 = vmatpush3.bf16.msra.mxu0 %v592_v10 }
  0x56   :  { %561 = vmatpush1.bf16.msra.mxu1 %v560_v13  ;;  %v323_v13 = vld [vmem:[%s937_s5 + $0x78] sm:$0xff]  ;;  %595 = vmatprep.subr.bf16.mxu0 %v594_v11 }
  0x57   :  { %563 = vmatprep.subr.bf16.mxu1 %v562_v14  ;;  %v596_v14 = vpack.c.bf16 %v323_v13, %v322_v12 }
  0x59   :  { %597 = vmatpush3.bf16.msra.mxu0 %v596_v14 }
  0x5a   :  { %565 = vmatpush1.bf16.msra.mxu1 %v564_v17  ;;  %v232_v17 = vrot.slane %v223_v15, %v82_v46 }
 0x109   :  { %v152_v49 = vpop.f32.mrb[0].mxu0 }
 0x10a   :  { %v153_v50 = vadd.f32 %v152_v49, %v79_v47  ;;  %v154_v51 = vpop.f32.mrb[1].mxu0 }
 0x10b   :  { %v155_v52 = vadd.f32 %v154_v51, %v83_v48 }
 0x10d   :  { %603 = vtanh.f32 %v155_v52 }
 0x10e   :  { %605 = vtanh.f32 %v153_v50 }
 0x117   :  { %v604_v53 = vpop.eup %603 }
 0x118   :  { %v606_v54 = vpop.eup %605  ;;  %299 = vmatprep.mubr.f32.mxu1 %v604_v53 }
 0x119   :  { %300 = vmatmul.mubr.f32.vlgmr.msra.gmra.mrb[0].mxu1 %v606_v54 }
 0x1ec   :  { %v301_v18 = vpop.f32.mrb[0].mxu1 }
 0x1ed   :  { %v302_v19 = vadd.f32 %v301_v18, %v228_v16  ;;  %v303_v20 = vpop.f32.mrb[1].mxu1 }
 0x1ee   :  { %v304_v21 = vadd.f32 %v303_v20, %v232_v17 }
 0x1f0   :  { %607 = vtanh.f32 %v304_v21 }
 0x1f1   :  { %609 = vtanh.f32 %v302_v19 }
 0x1fa   :  { %v608_v22 = vpop.eup %607 }
 0x1fb   :  { %v610_v23 = vpop.eup %609  ;;  %411 = vmatprep.mubr.f32.mxu0 %v608_v22 }
 0x1fc   :  { %412 = vmatmul.mubr.f32.vlgmr.msra.gmra.mrb[2].mxu0 %v610_v23 }
 0x2cf   :  { %v467_v24 = vpop.f32.mrb[2].mxu0 }
 0x2d0   :  { %v468_v26 = vpop.f32.mrb[3].mxu0 }
 0x2d1   :  { %v469_v27 = vadd.f32 %v468_v26, %v467_v24 }
 0x2d3   :  { %v414_v28 = vadd.f32 %v469_v27, %v434_v25 }
 0x2d5   :  { %418 = vst.msk [vmem:[#allocation5] sm:$0xff] %vm417_vm0, %v414_v28 }
 0x2d6   :  { %644 = shalt.err (!%p641_p12)
}
 0x2d7   :  { %s645_s25 = scalar_lea.hbm %s939_s7, 128 }
 0x2d8   :  { %p646_p13 = scmp.ne.s32.totalorder %s939_s7, %s645_s25  ;;  %p649_p0 = scmp.lt.u32.totalorder %s645_s25, %s939_s7 }
 0x2da   :  { %p651_p1 = pnand %p649_p0, %p646_p13 }
 0x2dc   :  { %654 = shalt.err (!%p651_p1)
}
 0x2dd   :  { %428 = dma.vmem_to_hbm [thread:$0]  %s426_s4, 128, %s939_s7, [#allocation4]  }
 0x2de   :  { %657 = dma.done.wait [#allocation4], 128  }
 0x2df   :  { %658 = vsyncadd [#allocation4], 4294967168 }
 0x2e0   :  { %432 = vsyncpa [#allocation3], 1 }
 0x2e1   :  { %433 = vsyncpa [#allocation4], 1 }

</bundles_post_ra>
